<compile_context>
chip_gen: v7x
topology: tpu7x:2x2x1
jax: 0.10.0
libtpu: 0.0.40
codegen_flags: <defaults>
</compile_context>

<pallas_src>
import functools
import math

import jax
import jax.numpy as jnp
from jax import lax
from jax.experimental import pallas as pl
from jax.experimental.pallas import tpu as pltpu


def _encoder_layer_kernel(
    x_ref, mask_ref,
    wqkv_ref, bqkv_ref, wo_ref, bo_ref,
    ln1_a_ref, ln1_b_ref, ln2_a_ref, ln2_b_ref,
    w1_ref, b1_ref, w2_ref, b2_ref,
    out_ref,
    *, num_heads, block_b, seq_len, eps, approx_recip):
    S = seq_len
    x = x_ref[...]                          # (block_b*S, D) f32
    D = x.shape[-1]
    dk = D // num_heads
    inv_sqrt_dk = 1.0 / math.sqrt(dk)
    mm_dtype = wqkv_ref.dtype               # f32 (exact) or bf16 (v6e/v7x fast path)

    def matmul(a, w_ref):                   # MXU, f32 accumulation
        return jnp.dot(a.astype(mm_dtype), w_ref[...],
                       preferred_element_type=jnp.float32)

    def layer_norm(z, a, b):
        # Matches the custom PyTorch LayerNorm exactly: unbiased std (ddof=1),
        # eps added to the std (not the variance).  Elementwise math in f32.
        mean = jnp.mean(z, axis=-1, keepdims=True)
        var = jnp.sum((z - mean) ** 2, axis=-1, keepdims=True) * (1.0 / (D - 1))
        std = jnp.sqrt(var)
        if approx_recip:
            norm = (z - mean) * pl.reciprocal(std + eps, approx=True)
        else:
            norm = (z - mean) / (std + eps)
        return a * norm + b

    # ---- sublayer 0: pre-norm self-attention -------------------------------
    y = layer_norm(x, ln1_a_ref[...], ln1_b_ref[...])
    qkv = matmul(y, wqkv_ref) + bqkv_ref[...]       # (block_b*S, 3D), single MXU pass
    qkv_c = qkv.astype(mm_dtype)

    # Additive mask bias hoisted out of the loops: 0 where attend, -1e9 masked.
    neg_bias = (mask_ref[...] - 1.0) * 1e9          # (block_b, 1, S)

    per_batch = []
    for b in range(block_b):                        # static unroll, block_b small
        r0 = b * S
        qkv_b = qkv_c[r0:r0 + S, :]                 # sublane-aligned (S % 8 == 0)
        bias_b = neg_bias[b]                        # (1, S) broadcasts over queries
        acc = None
        for h in range(num_heads):                  # static unroll; wo folded in
            lo = h * dk
            qh = qkv_b[:, lo:lo + dk]
            kh = qkv_b[:, D + lo:D + lo + dk]
            vh = qkv_b[:, 2 * D + lo:2 * D + lo + dk]
            # scores = qh @ kh.T — contract dk of both (no transpose copy)
            scores = lax.dot_general(
                qh, kh, (((1,), (1,)), ((), ())),
                preferred_element_type=jnp.float32)          # (S, S)
            scores = scores * inv_sqrt_dk + bias_b
            scores = scores - jnp.max(scores, axis=-1, keepdims=True)
            p = jnp.exp(scores)
            denom = jnp.sum(p, axis=-1, keepdims=True)
            if approx_recip:
                p = p * pl.reciprocal(denom, approx=True)
            else:
                p = p / denom
            ctx = jnp.dot(p.astype(mm_dtype), vh,
                          preferred_element_type=jnp.float32)          # (S, dk)
            # fold output projection: rows [lo, lo+dk) of wo (sublane-aligned)
            contrib = jnp.dot(ctx.astype(mm_dtype), wo_ref[lo:lo + dk, :],
                              preferred_element_type=jnp.float32)      # (S, D)
            acc = contrib if acc is None else acc + contrib
        per_batch.append(acc)
    attn = per_batch[0] if block_b == 1 else jnp.concatenate(per_batch, axis=0)
    attn = attn + bo_ref[...]

    # TODO(synk): dropout is identity (eval mode).  For long sequences, add a
    # KV grid axis with flash-style online softmax instead of materializing the
    # full (S, S) score matrix (needed to fit v7x's 64 MiB VMEM at large S).
    x1 = x + attn

    # ---- sublayer 1: pre-norm feed-forward ----------------------------------
    y2 = layer_norm(x1, ln2_a_ref[...], ln2_b_ref[...])
    hidden = jnp.maximum(matmul(y2, w1_ref) + b1_ref[...], 0.0)
    ffn = matmul(hidden, w2_ref) + b2_ref[...]

    out_ref[...] = (x1 + ffn).astype(out_ref.dtype)


def encoder_layer_forward(x, mask, params, *, num_heads, eps=1e-6,
                          block_b=None, matmul_dtype=jnp.float32,
                          approx_recip=None):
    """Pallas equivalent of EncoderLayer.forward(x, mask) in eval mode.

    x:    (B, S, D) float32
    mask: (B, 1, S) (nonzero = attend, 0 = masked key position)
    matmul_dtype: jnp.float32 for exact module semantics; jnp.bfloat16 to run
      the MXU at full rate on v6e/v7x (f32 accumulation, f32 elementwise math).
    """
    B, S, D = x.shape
    assert D % num_heads == 0
    assert S % 8 == 0, "sequence length must be sublane (8) aligned"
    if approx_recip is None:
        approx_recip = (matmul_dtype != jnp.float32)

    if block_b is None:
        # Batch several sequences per grid step to amortize per-step overhead,
        # but keep >= 2 grid steps so both v7x TensorCores get work.
        block_b = 1
        for cand in (8, 4, 2):
            if B % cand == 0 and B // cand >= 2:
                block_b = cand
                break
    assert B % block_b == 0
    num_blocks = B // block_b

    f32 = jnp.float32

    def row(p):       # 1-D params presented as (1, N) tiles
        return jnp.asarray(p, f32).reshape(1, -1)

    def wcast(p):     # matmul weights (optionally stored bf16 to halve VMEM/HBM)
        return jnp.asarray(p, f32).astype(matmul_dtype)

    # Fused QKV projection: one (D, 3D) weight instead of three D-wide matmuls.
    wqkv = wcast(jnp.concatenate([params["wq"], params["wk"], params["wv"]], axis=1))
    bqkv = row(jnp.concatenate([params["bq"], params["bk"], params["bv"]]))

    # x / out as a (B*S, D) slab: kernel matmuls see M = block_b*S rows.
    # NOTE: D=32 < 128 lanes -> stores are masked; padding D would change the
    # module's semantics, so we accept the partial-lane stores here.
    x2d = x.reshape(B * S, D).astype(f32)
    mask3d = jnp.asarray(mask, f32).reshape(B, 1, S)

    inputs = [
        x2d, mask3d,
        wqkv, bqkv, wcast(params["wo"]), row(params["bo"]),
        row(params["ln1_a"]), row(params["ln1_b"]),
        row(params["ln2_a"]), row(params["ln2_b"]),
        wcast(params["w1"]), row(params["b1"]),
        wcast(params["w2"]), row(params["b2"]),
    ]

    in_specs = [
        pl.BlockSpec((block_b * S, D), lambda i: (i, 0)),
        pl.BlockSpec((block_b, 1, S), lambda i: (i, 0, 0)),
    ] + [pl.BlockSpec(a.shape, lambda i: (0, 0)) for a in inputs[2:]]
    out_specs = pl.BlockSpec((block_b * S, D), lambda i: (i, 0))

    d_ff = params["w1"].shape[1]
    flops = 2 * B * S * (4 * D * D + 2 * S * D + 2 * D * d_ff)
    transcendentals = B * num_heads * S * S + 2 * B * S
    bytes_accessed = 2 * x2d.size * 4 + sum(
        int(a.size) * a.dtype.itemsize for a in inputs[1:])

    kernel = functools.partial(
        _encoder_layer_kernel, num_heads=num_heads, block_b=block_b,
        seq_len=S, eps=eps, approx_recip=approx_recip)

    out2d = pl.pallas_call(
        kernel,
        out_shape=jax.ShapeDtypeStruct((B * S, D), f32),
        grid=(num_blocks,),
        in_specs=in_specs,
        out_specs=out_specs,
        compiler_params=pltpu.CompilerParams(
            dimension_semantics=("parallel",),   # batch blocks are independent
            vmem_limit_bytes=32 * 1024 * 1024),
        cost_estimate=pl.CostEstimate(
            flops=int(flops), transcendentals=int(transcendentals),
            bytes_accessed=int(bytes_accessed)),
    )(*inputs)
    return out2d.reshape(B, S, D)


def encoder_layer_ref(x, mask, params, *, num_heads, eps=1e-6):
    """Pure-JAX reference mirroring the PyTorch module (eval mode)."""
    B, S, D = x.shape
    dk = D // num_heads

    def ln(z, a, b):
        mean = jnp.mean(z, -1, keepdims=True)
        var = jnp.sum((z - mean) ** 2, -1, keepdims=True) / (D - 1)
        std = jnp.sqrt(var)
        return a * (z - mean) / (std + eps) + b

    y = ln(x, params["ln1_a"], params["ln1_b"])
    q = y @ params["wq"] + params["bq"]
    k = y @ params["wk"] + params["bk"]
    v = y @ params["wv"] + params["bv"]
    q = q.reshape(B, S, num_heads, dk).transpose(0, 2, 1, 3)
    k = k.reshape(B, S, num_heads, dk).transpose(0, 2, 1, 3)
    v = v.reshape(B, S, num_heads, dk).transpose(0, 2, 1, 3)
    scores = jnp.einsum("bhqd,bhkd->bhqk", q, k) / math.sqrt(dk)
    m = mask[:, None, :, :]                       # (B, 1, 1, S)
    scores = jnp.where(m == 0, -1e9, scores)
    p = jax.nn.softmax(scores, axis=-1)
    attn = jnp.einsum("bhqk,bhkd->bhqd", p, v).transpose(0, 2, 1, 3).reshape(B, S, D)
    attn = attn @ params["wo"] + params["bo"]
    x1 = x + attn
    y2 = ln(x1, params["ln2_a"], params["ln2_b"])
    ffn = jnp.maximum(y2 @ params["w1"] + params["b1"], 0.0) @ params["w2"] + params["b2"]
    return x1 + ffn


if __name__ == "__main__":
    B, S, D, H, D_FF = 2, 8, 32, 4, 64

    key = jax.random.PRNGKey(0)
    ks = jax.random.split(key, 16)

    x = jax.random.normal(ks[0], (B, S, D), jnp.float32)
    # encoder padding mask: last two key positions of every sequence masked out
    mask = jnp.ones((B, 1, S), jnp.float32).at[:, :, -2:].set(0.0)

    def w(k, shp, scale=0.2):
        return scale * jax.random.normal(k, shp, jnp.float32)

    params = {
        "wq": w(ks[1], (D, D)),   "bq": w(ks[2], (D,)),
        "wk": w(ks[3], (D, D)),   "bk": w(ks[4], (D,)),
        "wv": w(ks[5], (D, D)),   "bv": w(ks[6], (D,)),
        "wo": w(ks[7], (D, D)),   "bo": w(ks[8], (D,)),
        "ln1_a": 1.0 + 0.1 * jax.random.normal(ks[9], (D,), jnp.float32),
        "ln1_b": 0.1 * jax.random.normal(ks[10], (D,), jnp.float32),
        "ln2_a": 1.0 + 0.1 * jax.random.normal(ks[11], (D,), jnp.float32),
        "ln2_b": 0.1 * jax.random.normal(ks[12], (D,), jnp.float32),
        "w1": w(ks[13], (D, D_FF)), "b1": w(ks[14], (D_FF,)),
        "w2": w(ks[15], (D_FF, D)), "b2": jnp.zeros((D,), jnp.float32),
    }

    ref = encoder_layer_ref(x, mask, params, num_heads=H)

    # Exact path (f32 MXU operands) — matches the PyTorch module numerics.
    out = jax.block_until_ready(encoder_layer_forward(x, mask, params, num_heads=H))
    assert out.shape == (B, S, D)
    assert jnp.allclose(out, ref, atol=1e-5, rtol=1e-5), (
        float(jnp.max(jnp.abs(out - ref))))

    # Fast path for v6e/v7x: bf16 MXU operands + approx reciprocal (f32 accum).
    out_bf16 = jax.block_until_ready(
        encoder_layer_forward(x, mask, params, num_heads=H,
                              matmul_dtype=jnp.bfloat16))
    assert jnp.allclose(out_bf16, ref, atol=0.3, rtol=0.05), (
        float(jnp.max(jnp.abs(out_bf16 - ref))))

    print("KERNEL_OK")
</pallas_src>

<mosaic_0001>
module attributes {stable_mosaic.version = 11 : i64} {
  func.func @_encoder_layer_kernel(%arg0: i32, %arg1: memref<8x32xf32, #tpu.memory_space<vmem>>, %arg2: memref<1x1x8xf32, #tpu.memory_space<vmem>>, %arg3: memref<32x96xf32, #tpu.memory_space<vmem>>, %arg4: memref<1x96xf32, #tpu.memory_space<vmem>>, %arg5: memref<32x32xf32, #tpu.memory_space<vmem>>, %arg6: memref<1x32xf32, #tpu.memory_space<vmem>>, %arg7: memref<1x32xf32, #tpu.memory_space<vmem>>, %arg8: memref<1x32xf32, #tpu.memory_space<vmem>>, %arg9: memref<1x32xf32, #tpu.memory_space<vmem>>, %arg10: memref<1x32xf32, #tpu.memory_space<vmem>>, %arg11: memref<32x64xf32, #tpu.memory_space<vmem>>, %arg12: memref<1x64xf32, #tpu.memory_space<vmem>>, %arg13: memref<64x32xf32, #tpu.memory_space<vmem>>, %arg14: memref<1x32xf32, #tpu.memory_space<vmem>>, %arg15: memref<8x32xf32, #tpu.memory_space<vmem>>) attributes {dimension_semantics = [#tpu.dimension_semantics<parallel>], iteration_bounds = array<i64: 2>, scalar_prefetch = 0 : i64, scratch_operands = 0 : i64, tpu.core_type = #tpu.core_type<tc>, window_params = [{transform_indices = @transform_0, window_bounds = array<i64: 8, 32>}, {transform_indices = @transform_1, window_bounds = array<i64: 1, 1, 8>}, {pipeline_mode = #tpu.pipeline_mode<synchronous>, transform_indices = @transform_2, window_bounds = array<i64: 32, 96>}, {pipeline_mode = #tpu.pipeline_mode<synchronous>, transform_indices = @transform_3, window_bounds = array<i64: 1, 96>}, {pipeline_mode = #tpu.pipeline_mode<synchronous>, transform_indices = @transform_4, window_bounds = array<i64: 32, 32>}, {pipeline_mode = #tpu.pipeline_mode<synchronous>, transform_indices = @transform_5, window_bounds = array<i64: 1, 32>}, {pipeline_mode = #tpu.pipeline_mode<synchronous>, transform_indices = @transform_6, window_bounds = array<i64: 1, 32>}, {pipeline_mode = #tpu.pipeline_mode<synchronous>, transform_indices = @transform_7, window_bounds = array<i64: 1, 32>}, {pipeline_mode = #tpu.pipeline_mode<synchronous>, transform_indices = @transform_8, window_bounds = array<i64: 1, 32>}, {pipeline_mode = #tpu.pipeline_mode<synchronous>, transform_indices = @transform_9, window_bounds = array<i64: 1, 32>}, {pipeline_mode = #tpu.pipeline_mode<synchronous>, transform_indices = @transform_10, window_bounds = array<i64: 32, 64>}, {pipeline_mode = #tpu.pipeline_mode<synchronous>, transform_indices = @transform_11, window_bounds = array<i64: 1, 64>}, {pipeline_mode = #tpu.pipeline_mode<synchronous>, transform_indices = @transform_12, window_bounds = array<i64: 64, 32>}, {pipeline_mode = #tpu.pipeline_mode<synchronous>, transform_indices = @transform_13, window_bounds = array<i64: 1, 32>}, {transform_indices = @transform_14, window_bounds = array<i64: 8, 32>}]} {
    %c0 = arith.constant 0 : index
    %c0_0 = arith.constant 0 : index
    %0 = vector.load %arg1[%c0, %c0_0] : memref<8x32xf32, #tpu.memory_space<vmem>>, vector<8x32xf32>
    %c0_1 = arith.constant 0 : index
    %c0_2 = arith.constant 0 : index
    %1 = vector.load %arg7[%c0_1, %c0_2] : memref<1x32xf32, #tpu.memory_space<vmem>>, vector<1x32xf32>
    %c0_3 = arith.constant 0 : index
    %c0_4 = arith.constant 0 : index
    %2 = vector.load %arg8[%c0_3, %c0_4] : memref<1x32xf32, #tpu.memory_space<vmem>>, vector<1x32xf32>
    %cst = arith.constant dense<0.000000e+00> : vector<8xf32>
    %3 = vector.multi_reduction <add>, %0, %cst [1] : vector<8x32xf32> to vector<8xf32>
    %4 = vector.shape_cast %3 : vector<8xf32> to vector<8x1xf32>
    %cst_5 = arith.constant 3.200000e+01 : f32
    %5 = vector.broadcast %cst_5 : f32 to vector<8x1xf32>
    %6 = arith.divf %4, %5 : vector<8x1xf32>
    %7 = vector.broadcast %6 : vector<8x1xf32> to vector<8x32xf32>
    %8 = arith.subf %0, %7 : vector<8x32xf32>
    %9 = arith.mulf %8, %8 : vector<8x32xf32>
    %cst_6 = arith.constant dense<0.000000e+00> : vector<8xf32>
    %10 = vector.multi_reduction <add>, %9, %cst_6 [1] : vector<8x32xf32> to vector<8xf32>
    %11 = vector.shape_cast %10 : vector<8xf32> to vector<8x1xf32>
    %cst_7 = arith.constant 0.0322580636 : f32
    %12 = vector.broadcast %cst_7 : f32 to vector<8x1xf32>
    %13 = arith.mulf %11, %12 : vector<8x1xf32>
    %14 = math.sqrt %13 : vector<8x1xf32>
    %15 = vector.broadcast %6 : vector<8x1xf32> to vector<8x32xf32>
    %16 = arith.subf %0, %15 : vector<8x32xf32>
    %cst_8 = arith.constant 9.99999997E-7 : f32
    %17 = vector.broadcast %cst_8 : f32 to vector<8x1xf32>
    %18 = arith.addf %14, %17 : vector<8x1xf32>
    %19 = vector.broadcast %18 : vector<8x1xf32> to vector<8x32xf32>
    %20 = arith.divf %16, %19 : vector<8x32xf32>
    %21 = vector.broadcast %1 : vector<1x32xf32> to vector<8x32xf32>
    %22 = arith.mulf %21, %20 : vector<8x32xf32>
    %23 = vector.broadcast %2 : vector<1x32xf32> to vector<8x32xf32>
    %24 = arith.addf %22, %23 : vector<8x32xf32>
    %c0_9 = arith.constant 0 : index
    %c0_10 = arith.constant 0 : index
    %25 = vector.load %arg3[%c0_9, %c0_10] : memref<32x96xf32, #tpu.memory_space<vmem>>, vector<32x96xf32>
    %cst_11 = arith.constant dense<0.000000e+00> : vector<8x96xf32>
    %26 = tpu.matmul %24, %25, %cst_11 {dimension_numbers = #tpu.dot_dimension_numbers<[1], [0], [0], [1], [0, 0, 1, 1], [], []>} : vector<8x32xf32>, vector<32x96xf32>, vector<8x96xf32> -> vector<8x96xf32>
    %c0_12 = arith.constant 0 : index
    %c0_13 = arith.constant 0 : index
    %27 = vector.load %arg4[%c0_12, %c0_13] : memref<1x96xf32, #tpu.memory_space<vmem>>, vector<1x96xf32>
    %28 = vector.broadcast %27 : vector<1x96xf32> to vector<8x96xf32>
    %29 = arith.addf %26, %28 : vector<8x96xf32>
    %c0_14 = arith.constant 0 : index
    %c0_15 = arith.constant 0 : index
    %c0_16 = arith.constant 0 : index
    %30 = vector.load %arg2[%c0_14, %c0_15, %c0_16] : memref<1x1x8xf32, #tpu.memory_space<vmem>>, vector<1x1x8xf32>
    %cst_17 = arith.constant 1.000000e+00 : f32
    %31 = vector.broadcast %cst_17 : f32 to vector<1x1x8xf32>
    %32 = arith.subf %30, %31 : vector<1x1x8xf32>
    %cst_18 = arith.constant 1.000000e+09 : f32
    %33 = vector.broadcast %cst_18 : f32 to vector<1x1x8xf32>
    %34 = arith.mulf %32, %33 : vector<1x1x8xf32>
    %35 = vector.shape_cast %34 : vector<1x1x8xf32> to vector<1x8xf32>
    %36 = vector.extract_strided_slice %29 {offsets = [0, 0], sizes = [8, 8], strides = [1, 1]} : vector<8x96xf32> to vector<8x8xf32>
    %37 = vector.extract_strided_slice %29 {offsets = [0, 32], sizes = [8, 8], strides = [1, 1]} : vector<8x96xf32> to vector<8x8xf32>
    %38 = vector.extract_strided_slice %29 {offsets = [0, 64], sizes = [8, 8], strides = [1, 1]} : vector<8x96xf32> to vector<8x8xf32>
    %cst_19 = arith.constant dense<0.000000e+00> : vector<8x8xf32>
    %39 = tpu.matmul %36, %37, %cst_19 {dimension_numbers = #tpu.dot_dimension_numbers<[1], [1], [0], [0], [0, 0, 1, 0], [], []>} : vector<8x8xf32>, vector<8x8xf32>, vector<8x8xf32> -> vector<8x8xf32>
    %cst_20 = arith.constant 0.353553385 : f32
    %40 = vector.broadcast %cst_20 : f32 to vector<8x8xf32>
    %41 = arith.mulf %39, %40 : vector<8x8xf32>
    %42 = vector.broadcast %35 : vector<1x8xf32> to vector<8x8xf32>
    %43 = arith.addf %41, %42 : vector<8x8xf32>
    %cst_21 = arith.constant dense<0xFF800000> : vector<8xf32>
    %44 = vector.multi_reduction <maximumf>, %43, %cst_21 [1] : vector<8x8xf32> to vector<8xf32>
    %45 = vector.shape_cast %44 : vector<8xf32> to vector<8x1xf32>
    %46 = vector.broadcast %45 : vector<8x1xf32> to vector<8x8xf32>
    %47 = arith.subf %43, %46 : vector<8x8xf32>
    %48 = math.exp %47 : vector<8x8xf32>
    %cst_22 = arith.constant dense<0.000000e+00> : vector<8xf32>
    %49 = vector.multi_reduction <add>, %48, %cst_22 [1] : vector<8x8xf32> to vector<8xf32>
    %50 = vector.shape_cast %49 : vector<8xf32> to vector<8x1xf32>
    %51 = vector.broadcast %50 : vector<8x1xf32> to vector<8x8xf32>
    %52 = arith.divf %48, %51 : vector<8x8xf32>
    %cst_23 = arith.constant dense<0.000000e+00> : vector<8x8xf32>
    %53 = tpu.matmul %52, %38, %cst_23 {dimension_numbers = #tpu.dot_dimension_numbers<[1], [0], [0], [1], [0, 0, 1, 1], [], []>} : vector<8x8xf32>, vector<8x8xf32>, vector<8x8xf32> -> vector<8x8xf32>
    %c0_24 = arith.constant 0 : index
    %c0_25 = arith.constant 0 : index
    %54 = vector.load %arg5[%c0_24, %c0_25] : memref<32x32xf32, #tpu.memory_space<vmem>>, vector<8x32xf32>
    %cst_26 = arith.constant dense<0.000000e+00> : vector<8x32xf32>
    %55 = tpu.matmul %53, %54, %cst_26 {dimension_numbers = #tpu.dot_dimension_numbers<[1], [0], [0], [1], [0, 0, 1, 1], [], []>} : vector<8x8xf32>, vector<8x32xf32>, vector<8x32xf32> -> vector<8x32xf32>
    %56 = vector.extract_strided_slice %29 {offsets = [0, 8], sizes = [8, 8], strides = [1, 1]} : vector<8x96xf32> to vector<8x8xf32>
    %57 = vector.extract_strided_slice %29 {offsets = [0, 40], sizes = [8, 8], strides = [1, 1]} : vector<8x96xf32> to vector<8x8xf32>
    %58 = vector.extract_strided_slice %29 {offsets = [0, 72], sizes = [8, 8], strides = [1, 1]} : vector<8x96xf32> to vector<8x8xf32>
    %cst_27 = arith.constant dense<0.000000e+00> : vector<8x8xf32>
    %59 = tpu.matmul %56, %57, %cst_27 {dimension_numbers = #tpu.dot_dimension_numbers<[1], [1], [0], [0], [0, 0, 1, 0], [], []>} : vector<8x8xf32>, vector<8x8xf32>, vector<8x8xf32> -> vector<8x8xf32>
    %cst_28 = arith.constant 0.353553385 : f32
    %60 = vector.broadcast %cst_28 : f32 to vector<8x8xf32>
    %61 = arith.mulf %59, %60 : vector<8x8xf32>
    %62 = vector.broadcast %35 : vector<1x8xf32> to vector<8x8xf32>
    %63 = arith.addf %61, %62 : vector<8x8xf32>
    %cst_29 = arith.constant dense<0xFF800000> : vector<8xf32>
    %64 = vector.multi_reduction <maximumf>, %63, %cst_29 [1] : vector<8x8xf32> to vector<8xf32>
    %65 = vector.shape_cast %64 : vector<8xf32> to vector<8x1xf32>
    %66 = vector.broadcast %65 : vector<8x1xf32> to vector<8x8xf32>
    %67 = arith.subf %63, %66 : vector<8x8xf32>
    %68 = math.exp %67 : vector<8x8xf32>
    %cst_30 = arith.constant dense<0.000000e+00> : vector<8xf32>
    %69 = vector.multi_reduction <add>, %68, %cst_30 [1] : vector<8x8xf32> to vector<8xf32>
    %70 = vector.shape_cast %69 : vector<8xf32> to vector<8x1xf32>
    %71 = vector.broadcast %70 : vector<8x1xf32> to vector<8x8xf32>
    %72 = arith.divf %68, %71 : vector<8x8xf32>
    %cst_31 = arith.constant dense<0.000000e+00> : vector<8x8xf32>
    %73 = tpu.matmul %72, %58, %cst_31 {dimension_numbers = #tpu.dot_dimension_numbers<[1], [0], [0], [1], [0, 0, 1, 1], [], []>} : vector<8x8xf32>, vector<8x8xf32>, vector<8x8xf32> -> vector<8x8xf32>
    %c8 = arith.constant 8 : index
    %c0_32 = arith.constant 0 : index
    %74 = vector.load %arg5[%c8, %c0_32] : memref<32x32xf32, #tpu.memory_space<vmem>>, vector<8x32xf32>
    %cst_33 = arith.constant dense<0.000000e+00> : vector<8x32xf32>
    %75 = tpu.matmul %73, %74, %cst_33 {dimension_numbers = #tpu.dot_dimension_numbers<[1], [0], [0], [1], [0, 0, 1, 1], [], []>} : vector<8x8xf32>, vector<8x32xf32>, vector<8x32xf32> -> vector<8x32xf32>
    %76 = arith.addf %55, %75 : vector<8x32xf32>
    %77 = vector.extract_strided_slice %29 {offsets = [0, 16], sizes = [8, 8], strides = [1, 1]} : vector<8x96xf32> to vector<8x8xf32>
    %78 = vector.extract_strided_slice %29 {offsets = [0, 48], sizes = [8, 8], strides = [1, 1]} : vector<8x96xf32> to vector<8x8xf32>
    %79 = vector.extract_strided_slice %29 {offsets = [0, 80], sizes = [8, 8], strides = [1, 1]} : vector<8x96xf32> to vector<8x8xf32>
    %cst_34 = arith.constant dense<0.000000e+00> : vector<8x8xf32>
    %80 = tpu.matmul %77, %78, %cst_34 {dimension_numbers = #tpu.dot_dimension_numbers<[1], [1], [0], [0], [0, 0, 1, 0], [], []>} : vector<8x8xf32>, vector<8x8xf32>, vector<8x8xf32> -> vector<8x8xf32>
    %cst_35 = arith.constant 0.353553385 : f32
    %81 = vector.broadcast %cst_35 : f32 to vector<8x8xf32>
    %82 = arith.mulf %80, %81 : vector<8x8xf32>
    %83 = vector.broadcast %35 : vector<1x8xf32> to vector<8x8xf32>
    %84 = arith.addf %82, %83 : vector<8x8xf32>
    %cst_36 = arith.constant dense<0xFF800000> : vector<8xf32>
    %85 = vector.multi_reduction <maximumf>, %84, %cst_36 [1] : vector<8x8xf32> to vector<8xf32>
    %86 = vector.shape_cast %85 : vector<8xf32> to vector<8x1xf32>
    %87 = vector.broadcast %86 : vector<8x1xf32> to vector<8x8xf32>
    %88 = arith.subf %84, %87 : vector<8x8xf32>
    %89 = math.exp %88 : vector<8x8xf32>
    %cst_37 = arith.constant dense<0.000000e+00> : vector<8xf32>
    %90 = vector.multi_reduction <add>, %89, %cst_37 [1] : vector<8x8xf32> to vector<8xf32>
    %91 = vector.shape_cast %90 : vector<8xf32> to vector<8x1xf32>
    %92 = vector.broadcast %91 : vector<8x1xf32> to vector<8x8xf32>
    %93 = arith.divf %89, %92 : vector<8x8xf32>
    %cst_38 = arith.constant dense<0.000000e+00> : vector<8x8xf32>
    %94 = tpu.matmul %93, %79, %cst_38 {dimension_numbers = #tpu.dot_dimension_numbers<[1], [0], [0], [1], [0, 0, 1, 1], [], []>} : vector<8x8xf32>, vector<8x8xf32>, vector<8x8xf32> -> vector<8x8xf32>
    %c16 = arith.constant 16 : index
    %c0_39 = arith.constant 0 : index
    %95 = vector.load %arg5[%c16, %c0_39] : memref<32x32xf32, #tpu.memory_space<vmem>>, vector<8x32xf32>
    %cst_40 = arith.constant dense<0.000000e+00> : vector<8x32xf32>
    %96 = tpu.matmul %94, %95, %cst_40 {dimension_numbers = #tpu.dot_dimension_numbers<[1], [0], [0], [1], [0, 0, 1, 1], [], []>} : vector<8x8xf32>, vector<8x32xf32>, vector<8x32xf32> -> vector<8x32xf32>
    %97 = arith.addf %76, %96 : vector<8x32xf32>
    %98 = vector.extract_strided_slice %29 {offsets = [0, 24], sizes = [8, 8], strides = [1, 1]} : vector<8x96xf32> to vector<8x8xf32>
    %99 = vector.extract_strided_slice %29 {offsets = [0, 56], sizes = [8, 8], strides = [1, 1]} : vector<8x96xf32> to vector<8x8xf32>
    %100 = vector.extract_strided_slice %29 {offsets = [0, 88], sizes = [8, 8], strides = [1, 1]} : vector<8x96xf32> to vector<8x8xf32>
    %cst_41 = arith.constant dense<0.000000e+00> : vector<8x8xf32>
    %101 = tpu.matmul %98, %99, %cst_41 {dimension_numbers = #tpu.dot_dimension_numbers<[1], [1], [0], [0], [0, 0, 1, 0], [], []>} : vector<8x8xf32>, vector<8x8xf32>, vector<8x8xf32> -> vector<8x8xf32>
    %cst_42 = arith.constant 0.353553385 : f32
    %102 = vector.broadcast %cst_42 : f32 to vector<8x8xf32>
    %103 = arith.mulf %101, %102 : vector<8x8xf32>
    %104 = vector.broadcast %35 : vector<1x8xf32> to vector<8x8xf32>
    %105 = arith.addf %103, %104 : vector<8x8xf32>
    %cst_43 = arith.constant dense<0xFF800000> : vector<8xf32>
    %106 = vector.multi_reduction <maximumf>, %105, %cst_43 [1] : vector<8x8xf32> to vector<8xf32>
    %107 = vector.shape_cast %106 : vector<8xf32> to vector<8x1xf32>
    %108 = vector.broadcast %107 : vector<8x1xf32> to vector<8x8xf32>
    %109 = arith.subf %105, %108 : vector<8x8xf32>
    %110 = math.exp %109 : vector<8x8xf32>
    %cst_44 = arith.constant dense<0.000000e+00> : vector<8xf32>
    %111 = vector.multi_reduction <add>, %110, %cst_44 [1] : vector<8x8xf32> to vector<8xf32>
    %112 = vector.shape_cast %111 : vector<8xf32> to vector<8x1xf32>
    %113 = vector.broadcast %112 : vector<8x1xf32> to vector<8x8xf32>
    %114 = arith.divf %110, %113 : vector<8x8xf32>
    %cst_45 = arith.constant dense<0.000000e+00> : vector<8x8xf32>
    %115 = tpu.matmul %114, %100, %cst_45 {dimension_numbers = #tpu.dot_dimension_numbers<[1], [0], [0], [1], [0, 0, 1, 1], [], []>} : vector<8x8xf32>, vector<8x8xf32>, vector<8x8xf32> -> vector<8x8xf32>
    %c24 = arith.constant 24 : index
    %c0_46 = arith.constant 0 : index
    %116 = vector.load %arg5[%c24, %c0_46] : memref<32x32xf32, #tpu.memory_space<vmem>>, vector<8x32xf32>
    %cst_47 = arith.constant dense<0.000000e+00> : vector<8x32xf32>
    %117 = tpu.matmul %115, %116, %cst_47 {dimension_numbers = #tpu.dot_dimension_numbers<[1], [0], [0], [1], [0, 0, 1, 1], [], []>} : vector<8x8xf32>, vector<8x32xf32>, vector<8x32xf32> -> vector<8x32xf32>
    %118 = arith.addf %97, %117 : vector<8x32xf32>
    %c0_48 = arith.constant 0 : index
    %c0_49 = arith.constant 0 : index
    %119 = vector.load %arg6[%c0_48, %c0_49] : memref<1x32xf32, #tpu.memory_space<vmem>>, vector<1x32xf32>
    %120 = vector.broadcast %119 : vector<1x32xf32> to vector<8x32xf32>
    %121 = arith.addf %118, %120 : vector<8x32xf32>
    %122 = arith.addf %0, %121 : vector<8x32xf32>
    %c0_50 = arith.constant 0 : index
    %c0_51 = arith.constant 0 : index
    %123 = vector.load %arg9[%c0_50, %c0_51] : memref<1x32xf32, #tpu.memory_space<vmem>>, vector<1x32xf32>
    %c0_52 = arith.constant 0 : index
    %c0_53 = arith.constant 0 : index
    %124 = vector.load %arg10[%c0_52, %c0_53] : memref<1x32xf32, #tpu.memory_space<vmem>>, vector<1x32xf32>
    %cst_54 = arith.constant dense<0.000000e+00> : vector<8xf32>
    %125 = vector.multi_reduction <add>, %122, %cst_54 [1] : vector<8x32xf32> to vector<8xf32>
    %126 = vector.shape_cast %125 : vector<8xf32> to vector<8x1xf32>
    %cst_55 = arith.constant 3.200000e+01 : f32
    %127 = vector.broadcast %cst_55 : f32 to vector<8x1xf32>
    %128 = arith.divf %126, %127 : vector<8x1xf32>
    %129 = vector.broadcast %128 : vector<8x1xf32> to vector<8x32xf32>
    %130 = arith.subf %122, %129 : vector<8x32xf32>
    %131 = arith.mulf %130, %130 : vector<8x32xf32>
    %cst_56 = arith.constant dense<0.000000e+00> : vector<8xf32>
    %132 = vector.multi_reduction <add>, %131, %cst_56 [1] : vector<8x32xf32> to vector<8xf32>
    %133 = vector.shape_cast %132 : vector<8xf32> to vector<8x1xf32>
    %cst_57 = arith.constant 0.0322580636 : f32
    %134 = vector.broadcast %cst_57 : f32 to vector<8x1xf32>
    %135 = arith.mulf %133, %134 : vector<8x1xf32>
    %136 = math.sqrt %135 : vector<8x1xf32>
    %137 = vector.broadcast %128 : vector<8x1xf32> to vector<8x32xf32>
    %138 = arith.subf %122, %137 : vector<8x32xf32>
    %cst_58 = arith.constant 9.99999997E-7 : f32
    %139 = vector.broadcast %cst_58 : f32 to vector<8x1xf32>
    %140 = arith.addf %136, %139 : vector<8x1xf32>
    %141 = vector.broadcast %140 : vector<8x1xf32> to vector<8x32xf32>
    %142 = arith.divf %138, %141 : vector<8x32xf32>
    %143 = vector.broadcast %123 : vector<1x32xf32> to vector<8x32xf32>
    %144 = arith.mulf %143, %142 : vector<8x32xf32>
    %145 = vector.broadcast %124 : vector<1x32xf32> to vector<8x32xf32>
    %146 = arith.addf %144, %145 : vector<8x32xf32>
    %c0_59 = arith.constant 0 : index
    %c0_60 = arith.constant 0 : index
    %147 = vector.load %arg11[%c0_59, %c0_60] : memref<32x64xf32, #tpu.memory_space<vmem>>, vector<32x64xf32>
    %cst_61 = arith.constant dense<0.000000e+00> : vector<8x64xf32>
    %148 = tpu.matmul %146, %147, %cst_61 {dimension_numbers = #tpu.dot_dimension_numbers<[1], [0], [0], [1], [0, 0, 1, 1], [], []>} : vector<8x32xf32>, vector<32x64xf32>, vector<8x64xf32> -> vector<8x64xf32>
    %c0_62 = arith.constant 0 : index
    %c0_63 = arith.constant 0 : index
    %149 = vector.load %arg12[%c0_62, %c0_63] : memref<1x64xf32, #tpu.memory_space<vmem>>, vector<1x64xf32>
    %150 = vector.broadcast %149 : vector<1x64xf32> to vector<8x64xf32>
    %151 = arith.addf %148, %150 : vector<8x64xf32>
    %cst_64 = arith.constant 0.000000e+00 : f32
    %152 = vector.broadcast %cst_64 : f32 to vector<8x64xf32>
    %153 = arith.maximumf %151, %152 : vector<8x64xf32>
    %c0_65 = arith.constant 0 : index
    %c0_66 = arith.constant 0 : index
    %154 = vector.load %arg13[%c0_65, %c0_66] : memref<64x32xf32, #tpu.memory_space<vmem>>, vector<64x32xf32>
    %cst_67 = arith.constant dense<0.000000e+00> : vector<8x32xf32>
    %155 = tpu.matmul %153, %154, %cst_67 {dimension_numbers = #tpu.dot_dimension_numbers<[1], [0], [0], [1], [0, 0, 1, 1], [], []>} : vector<8x64xf32>, vector<64x32xf32>, vector<8x32xf32> -> vector<8x32xf32>
    %c0_68 = arith.constant 0 : index
    %c0_69 = arith.constant 0 : index
    %156 = vector.load %arg14[%c0_68, %c0_69] : memref<1x32xf32, #tpu.memory_space<vmem>>, vector<1x32xf32>
    %157 = vector.broadcast %156 : vector<1x32xf32> to vector<8x32xf32>
    %158 = arith.addf %155, %157 : vector<8x32xf32>
    %159 = arith.addf %122, %158 : vector<8x32xf32>
    %c0_70 = arith.constant 0 : index
    %c0_71 = arith.constant 0 : index
    %160 = vector.load %arg15[%c0_70, %c0_71] : memref<8x32xf32, #tpu.memory_space<vmem>>, vector<8x32xf32>
    tpu.vector_store %arg15[%c0_70, %c0_71], %159 {strides = array<i32>} : memref<8x32xf32, #tpu.memory_space<vmem>>, vector<8x32xf32>,
    return
  }
  func.func @transform_0(%arg0: i32) -> (i32, i32) {
    %c0_i32 = arith.constant 0 : i32
    %c0_i32_0 = arith.constant 0 : i32
    return %arg0, %c0_i32 : i32, i32
  }
  func.func @transform_1(%arg0: i32) -> (i32, i32, i32) {
    %c0_i32 = arith.constant 0 : i32
    %c0_i32_0 = arith.constant 0 : i32
    %c0_i32_1 = arith.constant 0 : i32
    return %arg0, %c0_i32, %c0_i32_0 : i32, i32, i32
  }
  func.func @transform_2(%arg0: i32) -> (i32, i32) {
    %c0_i32 = arith.constant 0 : i32
    %c0_i32_0 = arith.constant 0 : i32
    %c0_i32_1 = arith.constant 0 : i32
    return %c0_i32, %c0_i32_0 : i32, i32
  }
  func.func @transform_3(%arg0: i32) -> (i32, i32) {
    %c0_i32 = arith.constant 0 : i32
    %c0_i32_0 = arith.constant 0 : i32
    %c0_i32_1 = arith.constant 0 : i32
    return %c0_i32, %c0_i32_0 : i32, i32
  }
  func.func @transform_4(%arg0: i32) -> (i32, i32) {
    %c0_i32 = arith.constant 0 : i32
    %c0_i32_0 = arith.constant 0 : i32
    %c0_i32_1 = arith.constant 0 : i32
    return %c0_i32, %c0_i32_0 : i32, i32
  }
  func.func @transform_5(%arg0: i32) -> (i32, i32) {
    %c0_i32 = arith.constant 0 : i32
    %c0_i32_0 = arith.constant 0 : i32
    %c0_i32_1 = arith.constant 0 : i32
    return %c0_i32, %c0_i32_0 : i32, i32
  }
  func.func @transform_6(%arg0: i32) -> (i32, i32) {
    %c0_i32 = arith.constant 0 : i32
    %c0_i32_0 = arith.constant 0 : i32
    %c0_i32_1 = arith.constant 0 : i32
    return %c0_i32, %c0_i32_0 : i32, i32
  }
  func.func @transform_7(%arg0: i32) -> (i32, i32) {
    %c0_i32 = arith.constant 0 : i32
    %c0_i32_0 = arith.constant 0 : i32
    %c0_i32_1 = arith.constant 0 : i32
    return %c0_i32, %c0_i32_0 : i32, i32
  }
  func.func @transform_8(%arg0: i32) -> (i32, i32) {
    %c0_i32 = arith.constant 0 : i32
    %c0_i32_0 = arith.constant 0 : i32
    %c0_i32_1 = arith.constant 0 : i32
    return %c0_i32, %c0_i32_0 : i32, i32
  }
  func.func @transform_9(%arg0: i32) -> (i32, i32) {
    %c0_i32 = arith.constant 0 : i32
    %c0_i32_0 = arith.constant 0 : i32
    %c0_i32_1 = arith.constant 0 : i32
    return %c0_i32, %c0_i32_0 : i32, i32
  }
  func.func @transform_10(%arg0: i32) -> (i32, i32) {
    %c0_i32 = arith.constant 0 : i32
    %c0_i32_0 = arith.constant 0 : i32
    %c0_i32_1 = arith.constant 0 : i32
    return %c0_i32, %c0_i32_0 : i32, i32
  }
  func.func @transform_11(%arg0: i32) -> (i32, i32) {
    %c0_i32 = arith.constant 0 : i32
    %c0_i32_0 = arith.constant 0 : i32
    %c0_i32_1 = arith.constant 0 : i32
    return %c0_i32, %c0_i32_0 : i32, i32
  }
  func.func @transform_12(%arg0: i32) -> (i32, i32) {
    %c0_i32 = arith.constant 0 : i32
    %c0_i32_0 = arith.constant 0 : i32
    %c0_i32_1 = arith.constant 0 : i32
    return %c0_i32, %c0_i32_0 : i32, i32
  }
  func.func @transform_13(%arg0: i32) -> (i32, i32) {
    %c0_i32 = arith.constant 0 : i32
    %c0_i32_0 = arith.constant 0 : i32
    %c0_i32_1 = arith.constant 0 : i32
    return %c0_i32, %c0_i32_0 : i32, i32
  }
  func.func @transform_14(%arg0: i32) -> (i32, i32) {
    %c0_i32 = arith.constant 0 : i32
    %c0_i32_0 = arith.constant 0 : i32
    return %arg0, %c0_i32 : i32, i32
  }
}

</mosaic_0001>

<bundles_post_ra>
// kernel: tpu_custom_call.1
= control target key start
LH: loop header
LB: loop body
LE: loop exit
PB: predicated region body
PF: predicated region fallthrough
CT: control target
= control target key end

     0   :  { %s2755_s0 = inlined_call_operand.hbm [shape: f32[16,32], index: 0, kind: input, shape index: {}]   ;;  %s2756_s1 = inlined_call_operand.vmem [shape: f32[2,1,8], index: 1, kind: input, shape index: {}]   ;;  %s2757_s2 = inlined_call_operand.vmem [shape: f32[32,96], index: 2, kind: input, shape index: {}]   ;;  %s2758_s3 = inlined_call_operand.vmem [shape: f32[1,96], index: 3, kind: input, shape index: {}]   ;;  %s2759_s4 = inlined_call_operand.vmem [shape: f32[32,32], index: 4, kind: input, shape index: {}]   ;;  %s2760_s5 = inlined_call_operand.vmem [shape: f32[1,32], index: 5, kind: input, shape index: {}]   ;;  %s2761_s6 = inlined_call_operand.vmem [shape: f32[1,32], index: 6, kind: input, shape index: {}]   ;;  %s2762_s7 = inlined_call_operand.vmem [shape: f32[1,32], index: 7, kind: input, shape index: {}]   ;;  %s2763_s8 = inlined_call_operand.vmem [shape: f32[1,32], index: 8, kind: input, shape index: {}]   ;;  %s2764_s9 = inlined_call_operand.vmem [shape: f32[1,32], index: 9, kind: input, shape index: {}]   ;;  %s2765_s10 = inlined_call_operand.vmem [shape: f32[32,64], index: 10, kind: input, shape index: {}]   ;;  %s2766_s11 = inlined_call_operand.vmem [shape: f32[1,64], index: 11, kind: input, shape index: {}]   ;;  %s2767_s12 = inlined_call_operand.vmem [shape: f32[64,32], index: 12, kind: input, shape index: {}]   ;;  %s2768_s13 = inlined_call_operand.vmem [shape: f32[1,32], index: 13, kind: input, shape index: {}]   ;;  %s2769_s14 = inlined_call_operand.hbm [shape: f32[16,32], index: 14, kind: output, shape index: {}]  }
   0x1   :  { %2776 = sst [smem:[#allocation12_spill]] %s2769_s14 }
   0x2   :  { %19 = vsyncpa [#allocation3], 0 }
   0x3   :  { %21 = vsyncpa [#allocation3 + $0x1], 0 }
   0x4   :  { %22 = vsyncpa [#allocation4], 0 }
   0x5   :  { %24 = vsyncpa [#allocation4 + $0x1], 0  ;;  %s2390_s29 = smov 0   ;;  %s2392_s30 = smov 0  }
   0x6   :  { %s2394_s15 = smov 0   ;;  %s2396_s16 = smov 0  }
   0x7 LB: > { %2777 = sst [smem:[#allocation8_spill]] %s2285_s29  ;;  %s2411_s17 = sadd.s32 4294967295, %s2297_s16   ;;  %s2297_s16 = sphi %s2396_s16, %s2793_s16   ;;  %s2293_s15 = sphi %s2394_s15, %s2795_s15   ;;  %s2289_s30 = sphi %s2392_s30, %s2797_s30   ;;  %s2285_s29 = sphi %s2390_s29, %s2796_s29  }
   0x8   : > { %2778 = sst [smem:[#allocation9_spill]] %s2293_s15  ;;  %s1909_s18 = sadd.s32 4294967294, %s2297_s16  }
   0x9   : > { %s2415_s19 = sadd.s32 1, %s2297_s16   ;;  %s37_s20 = sadd.s32 1, %s2293_s15 }
   0xa   : > { %2779 = sst [smem:[#allocation10_spill]] %s2415_s19  ;;  %s34_s21 = ssub.s32 %s2297_s16, %s2415_s19 }
   0xb   : > { %p44_p0 = scmp.ne.s32.totalorder %s2293_s15, %s2289_s30  ;;  %p35_p1 = scmp.eq.s32.totalorder %s34_s21, 0 }
   0xc   : > { %p45_p2 = scmp.eq.s32.totalorder %s2297_s16, 0  ;;  %p50_p3 = scmp.ne.s32.totalorder %s2289_s30, %s2285_s29 }
   0xd   : > { %p51_p4 = scmp.eq.s32.totalorder %s2411_s17, 0  ;;  %p352_p7 = scmp.eq.s32.totalorder %s2411_s17, 1 }
   0xe   : > { %s2427_s22 = scalar_select %p35_p1, %s2293_s15, %s37_s20  }
   0xf   : > { %p2429_p5 = por %p45_p2, %p44_p0  ;;  %p2433_p6 = por %p51_p4, %p50_p3 }
  0x10   : > { %2780 = sst [smem:[#allocation11_spill]] %s2427_s22  ;;  %p358_p8 = scmp.eq.s32.totalorder %s1909_s18, 1 }
  0x11   : > { %p2129_p10 = scmp.lt.s32.totalorder %s2297_s16, 2  ;;  %p2440_p11 = por %p352_p7, %p44_p0 }
  0x12   : > { %p2444_p12 = por %p358_p8, %p50_p3  ;;  %s414_s27 = sand.u32 1, %s2293_s15  }
  0x13   : > { %s2783_s25 = scalar_select %p2440_p11, 1, 0 }
  0x14   : > { %s2784_s26 = scalar_select %p2444_p12, 1, 0 }
  0x15   : > { %s1913_s28 = sshll.u32 %s2297_s16, 7  ;;  %s1912_s20 = sshll.u32 %s414_s27, 3 }
  0x16   : > { %s2453_s19 = scalar_lea.hbm %s2755_s0, %s1913_s28  ;;  %s418_s18 = scalar_lea.vmem [#allocation2], %s1912_s20 }
  0x17   : > { %s425_s29 = sshll.u32 %s418_s18, 4  ;;  %p2457_p13 = pnand %p2129_p10, %p2429_p5  ;;  %s2461_s29 = int_to_ptr.vmem [resolvable:$true] %s425_s29 }
  0x18   : > { %s415_s22 = scalar_lea.sflag [#allocation3], %s414_s27  ;;  %s2201_s28 = scalar_lea.hbm %s2453_s19, 128 }
  0x19   : > { %p2202_p2 = scmp.ne.s32.totalorder %s2453_s19, %s2201_s28  ;;  %p2203_p3 = pneg %p2457_p13 }
  0x1a   : > { %s2206_s21 = scalar_lea.hbm %s2755_s0, 256  ;;  %p2207_p5 = scmp.lt.u32.totalorder %s2453_s19, %s2755_s0 }
  0x1b   : > { %p2204_p4 = pnand %p2203_p3, %p2202_p2  ;;  %p2208_p8 = scmp.lt.u32.totalorder %s2206_s21, %s2201_s28 }
  0x1c   : > { %p2210_p9 = scmp.lt.u32.totalorder %s2201_s28, %s2453_s19 }
  0x1d   : > { %p2205_p7 = pneg %p2204_p4  ;;  %p2209_p10 = por %p2208_p8, %p2207_p5 }
  0x1f   : > { %p2211_p0 = por %p2210_p9, %p2209_p10 }
  0x21   : > { %p2212_p1 = pnand %p2211_p0, %p2205_p7 }
  0x23   : > { %2215 = shalt.err (!%p2212_p1)
}
  0x24   : > { %s2216_s27 = scalar_lea.vmem %s2461_s29, 128  ;;  %s2299_s23 = smov [#allocation2]  }
  0x25   : > { %p2217_p2 = scmp.ne.s32.totalorder %s2461_s29, %s2216_s27  ;;  %s2221_s20 = sshll.u32 %s2299_s23, 4  ;;  %s2222_s20 = int_to_ptr.vmem [resolvable:$false] %s2221_s20 }
  0x26   : > { %s2223_s15 = scalar_lea.vmem %s2222_s20, 256  ;;  %p2224_p11 = scmp.lt.s32.totalorder %s2461_s29, %s2222_s20 }
  0x27   : > { %p2219_p4 = pnand %p2217_p2, %p2203_p3  ;;  %p2225_p5 = scmp.lt.s32.totalorder %s2223_s15, %s2216_s27 }
  0x29   : > { %p2220_p12 = pneg %p2219_p4  ;;  %p2226_p8 = por %p2225_p5, %p2224_p11 }
  0x2b   : > { %p2227_p9 = pnand %p2226_p8, %p2220_p12 }
  0x2d   : > { %2230 = shalt.err (!%p2227_p9)
}
  0x2e   : > { %2124 = dma.hbm_to_vmem [thread:$0]  (!%p2457_p13), %s2453_s19, 128, %s2461_s29, %s415_s22  }
  0x2f   : > { %p2786_p0 = scmp.lt.s32.totalorder %s2297_s16, 3  ;;  %p2787_p1 = scmp.ge.s32.totalorder %s2297_s16, 1 }
  0x31   : > { %p437_p3 = pnand %p2787_p1, %p2786_p0 }
  0x32   : > { %s2495_s28 = sand.u32 (!%p437_p3), 1, %s2289_s30  }
  0x33   : > { %440 = sbr.rel (%p437_p3) target bundleno = 3738 (0xe9a), region = 76  ;;  %s1915_s21 = sshll.u32 (!%p437_p3), %s2495_s28, 3 }
  0x34   : > { %s443_s18 = scalar_lea.sflag (!%p437_p3), [#allocation3], %s2495_s28  ;;  %s446_s14 = scalar_lea.vmem (!%p437_p3), [#allocation2], %s1915_s21 }
  0x3a   : > { %2276 = dma.done.wait (%p2433_p6), %s443_s18, 128  }
  0x3b   : > { %2278 = vsyncadd (%p2433_p6), %s443_s18, 4294967168  ;;  %vm500_vm0 = vcmask 261120   ;;  %v2505_v0 = vld [vmem:[%s446_s14] sm:$0xff]  ;;  %v538_v9 = vld [vmem:[%s2757_s2 + $0x10] sm:$0xff]  ;;  %v2300_v10 = vmov 0.0|0.0   ;;  %vm2301_vm1 = vmmov 0   ;;  %v703_v36 = vlaneseq }
  0x3c   : > { %v501_v1 = vsel %vm500_vm0, %v2505_v0, 0.0  ;;  %v536_v7 = vld [vmem:[%s2757_s2] sm:$0xff]  ;;  %v537_v8 = vld [vmem:[%s2757_s2 + $0x8] sm:$0xff]  ;;  %2093 = vmatprep.subr.bf16.mxu0 %v2300_v10  ;;  %v539_v12 = vld [vmem:[%s2757_s2 + $0x18] sm:$0xff]  ;;  %v2302_v13 = vmov 0.0   ;;  %s2303_s27 = smov 120  }
  0x3d   : > { %502 = vadd.xlane.f32.xlu0 %v501_v1  ;;  %v2094_v11 = vpack.c.bf16 %v537_v8, %v536_v7  ;;  %2000 = vmatprep.mubr.msk.f32.mxu0 %vm2301_vm1, %v2302_v13  ;;  %v2097_v14 = vpack.c.bf16 %v539_v12, %v538_v9  ;;  %v1917_v24 = vld [vmem:[%s2761_s6] ss:$0 sm:$0xff]  ;;  %s2304_s23 = smov 96   ;;  %s2305_s20 = smov 88   ;;  %vm626_vm4 = vcmask 64512   ;;  %v704_v39 = vshrl.u32 %v703_v36, 7 }
  0x3e   : > { %2008 = vmatprep.subr.mxu1 %v2302_v13  ;;  %2010 = vmatprep.mubr.msk.f32.mxu1 %vm2301_vm1, %v2302_v13  ;;  %v1918_v26 = vld [vmem:[%s2762_s7] ss:$0 sm:$0xff]  ;;  %p494_p6 = scmp.lt.s32.totalorder %s2411_s17, 1  ;;  %s2306_s19 = smov 56   ;;  %v964_v63 = vld [vmem:[%s2759_s4 + $0x8] sm:$0xff]  ;;  %vm1740_vm7 = vcmask 523264  }
  0x3f   : > { %2095 = vmatpush3.bf16.msra.mxu0 %v2094_v11  ;;  %v1919_v29 = vld [vmem:[%s2758_s3] ss:$0 sm:$0xff]  ;;  %v705_v41 = vsub.s32 0, %v704_v39  ;;  %s2307_s24 = smov 64   ;;  %s2308_s22 = smov 80  }
  0x40   : > { %2096 = vmatprep.subr.bf16.mxu0 %v2300_v10  ;;  %s495_s15 = scalar_select %p494_p6, %s2411_s17, 1  ;;  %v796_v9 = vld [vmem:[%s2759_s4] sm:$0xff] }
  0x41   : > { %s2310_s14 = smov 48   ;;  %p2789_p12 = scmp.ne.s32.totalorder %s2783_s25, 0 }
  0x42   : > { %s496_s29 = scalar_lea.vmem %s2756_s1, %s495_s15 }
  0x43   : > { %2098 = vmatpush3.bf16.msra.mxu0 %v2097_v14  ;;  %v620_v37 = vld [vmem:[%s496_s29] sm:$0x1]  ;;  %s2311_s29 = smov 104  }
  0x44   : > { %2003 = vmatprep.subr.mxu0 %v2302_v13  ;;  %v1921_v38 = vadd.f32 -1.0, %v620_v37 }
  0x46   : > { %v622_v40 = vmul.f32 1e+09, %v1921_v38 }
  0x48   : > { %v2564_v42 = vrot.slane %v622_v40, %v705_v41  ;;  %v1278_v40 = vld [vmem:[%s2759_s4 + $0x10] sm:$0xff] }
  0xca   : > { %v503_v2 = vpop.xlane.xlu0 %502 }
  0xcb   : > { %v505_v3 = vmul.f32 0.03125, %v503_v2 }
  0xcd   : > { %v506_v4 = vsub.f32 %v2505_v0, %v505_v3 }
  0xcf   : > { %v507_v5 = vmul.f32 %v506_v4, %v506_v4 }
  0xd1   : > { %v508_v6 = vsel %vm500_vm0, %v507_v5, 0.0 }
  0xd2   : > { %509 = vadd.xlane.f32.xlu0 %v508_v6 }
 0x15f   : > { %v510_v15 = vpop.xlane.xlu0 %509 }
 0x160   : > { %v511_v16 = vmul.f32 0.032258064, %v510_v15 }
 0x162   : > { %2177 = vrsqrt.f32 %v511_v16  ;;  %vm514_vm2 = vcmp.eq.f32.partialorder %v511_v16, inf  ;;  %v517_v19 = vand.u32 2147483648, %v511_v16  ;;  %vm516_vm3 = vcmp.eq.f32.partialorder %v511_v16, 0.0 }
 0x16c   : > { %v2178_v17 = vpop.eup %2177 }
 0x16d   : > { %v513_v18 = vmul.f32 %v2178_v17, %v511_v16 }
 0x16f   : > { %v515_v20 = vsel %vm514_vm2, %v511_v16, %v513_v18 }
 0x170   : > { %v518_v21 = vsel %vm516_vm3, %v517_v19, %v515_v20 }
 0x171   : > { %v519_v22 = vadd.f32 1e-06, %v518_v21 }
 0x173   : > { %2179 = vrcp.f32 %v519_v22 }
 0x17d   : > { %v2180_v23 = vpop.eup %2179 }
 0x17e   : > { %v521_v25 = vmul.f32 %v2180_v23, %v506_v4 }
 0x180   : > { %v528_v27 = vmul.f32 %v1917_v24, %v521_v25 }
 0x182   : > { %v535_v28 = vadd.f32 %v1918_v26, %v528_v27 }
 0x184   : > { %2001 = vmatmul.mubr.msk.f32.vlgmr.msra.gmra.mrb[0].mxu0 %vm500_vm0, %v535_v28 }
 0x185   : > { %2005 = vmatprep.mubr.msk.f32.mxu0 %vm2301_vm1, %v2302_v13 }
 0x257   : > { %v616_v30 = vpop.f32.mrb[0].mxu0 }
 0x258   : > { %v2543_v31 = vadd.f32 %v1919_v29, %v616_v30  ;;  %v2002_v32 = vpop.f32.mrb[1].mxu0 }
 0x25a   : > { %797 = vrot.lane.b32.xlu0 %v2543_v31, %s2303_s27  ;;  %624 = vrot.lane.b32.xlu1 %v2543_v31, %s2304_s23  ;;  %s2309_s27 = smov 112  }
 0x25e   : > { %799 = vrot.lane.b32.xlu1 %v2543_v31, %s2305_s20  ;;  %s2788_s20 = sld [smem:[#allocation12_spill]] }
 0x2cc   : > { %v625_v33 = vpop.permute.xlu1 %624  ;;  %v798_v35 = vpop.permute.xlu0 %797 }
 0x2cd   : > { %2004 = vmatpush3.xpose.msk.msra.mxu0 %vm626_vm4, %v625_v33 }
 0x2ce   : > { %2013 = vmatprep.subr.mxu0 %v2302_v13 }
 0x2d0   : > { %2006 = vmatmul.mubr.msk.f32.vlgmr.msra.gmra.mrb[2].mxu0 %vm626_vm4, %v2543_v31  ;;  %v800_v34 = vpop.permute.xlu1 %799 }
 0x2d1   : > { %2014 = vmatpush3.xpose.msk.msra.mxu0 %vm626_vm4, %v800_v34  ;;  %2015 = vmatprep.mubr.msk.f32.mxu0 %vm2301_vm1, %v2302_v13 }
 0x2d2   : > { %2023 = vmatprep.subr.mxu0 %v2302_v13 }
 0x2d4   : > { %2016 = vmatmul.mubr.msk.f32.vlgmr.msra.gmra.mrb[4].mxu0 %vm626_vm4, %v798_v35 }
 0x2d5   : > { %2025 = vmatprep.mubr.msk.f32.mxu0 %vm2301_vm1, %v2302_v13  ;;  %2024 = vmatpush3.msra.mxu0 %v964_v63  ;;  %v1938_v63 = vld [vmem:[%s2760_s5] ss:$0 sm:$0xff] }
 0x2d6   : > { %2033 = vmatprep.subr.mxu0 %v2302_v13 }
 0x3a3   : > { %v697_v43 = vpop.f32.mrb[2].mxu0 }
 0x3a4   : > { %v701_v44 = vmul.f32 0.35355338, %v697_v43  ;;  %v2007_v45 = vpop.f32.mrb[3].mxu0 }
 0x3a6   : > { %v708_v46 = vadd.f32 %v2564_v42, %v701_v44 }
 0x3a7   : > { %v871_v47 = vpop.f32.mrb[4].mxu0 }
 0x3a8   : > { %v875_v48 = vmul.f32 0.35355338, %v871_v47  ;;  %v2017_v49 = vpop.f32.mrb[5].mxu0  ;;  %v709_v50 = vsel %vm626_vm4, %v708_v46, -inf }
 0x3a9   : > { %710 = vmax.xlane.f32.xlu1 %v709_v50 }
 0x3aa   : > { %v876_v51 = vadd.f32 %v875_v48, %v2564_v42 }
 0x3ac   : > { %v877_v52 = vsel %vm626_vm4, %v876_v51, -inf }
 0x3ad   : > { %878 = vmax.xlane.f32.xlu0 %v877_v52 }
 0x3c3   : > { %888 = vrot.lane.b32.xlu0 %v2543_v31, %s2306_s19  ;;  %s2312_s19 = smov 72  }
 0x436   : > { %v711_v53 = vpop.xlane.xlu1 %710 }
 0x437   : > { %v712_v54 = vsub.f32 %v708_v46, %v711_v53 }
 0x439   : > { %v713_v55 = vmul.f32 1.442695, %v712_v54  ;;  %v1520_v54 = vld [vmem:[%s2759_s4 + $0x18] sm:$0xff] }
 0x43a   : > { %v879_v56 = vpop.xlane.xlu0 %878 }
 0x43b   : > { %2181 = vpow2.f32 %v713_v55  ;;  %v880_v57 = vsub.f32 %v876_v51, %v879_v56 }
 0x43d   : > { %v881_v58 = vmul.f32 1.442695, %v880_v57 }
 0x43e   : > { %v889_v6 = vpop.permute.xlu0 %888 }
 0x43f   : > { %2183 = vpow2.f32 %v881_v58 }
 0x445   : > { %v2182_v59 = vpop.eup %2181 }
 0x446   : > { %v715_v60 = vsel %vm626_vm4, %v2182_v59, 0.0 }
 0x447   : > { %716 = vadd.xlane.f32.xlu1 %v715_v60 }
 0x449   : > { %v2184_v61 = vpop.eup %2183 }
 0x44a   : > { %v883_v62 = vsel %vm626_vm4, %v2184_v61, 0.0 }
 0x44b   : > { %884 = vadd.xlane.f32.xlu1 %v883_v62 }
 0x45c   : > { %720 = vrot.lane.b32.xlu1 %v2543_v31, %s2307_s24  ;;  %s493_s24 = scalar_lea.vmem [#allocation5], %s1915_s21  ;;  %s2314_s21 = smov [#allocation5]  }
 0x460   : > { %1113 = vrot.lane.b32.xlu1 %v2543_v31, %s2308_s22  ;;  %s1830_s22 = sshll.u32 %s493_s24, 4  ;;  %s2712_s22 = int_to_ptr.vmem [resolvable:$true] %s1830_s22 }
 0x461   : > { %s2231_s18 = scalar_lea.vmem %s2712_s22, 128 }
 0x462   : > { %p2232_p11 = scmp.ne.s32.totalorder %s2712_s22, %s2231_s18 }
 0x464   : > { %1111 = vrot.lane.b32.xlu1 %v2543_v31, %s2309_s27  ;;  %s2313_s27 = smov 40   ;;  %p2233_p13 = pnand %p2232_p11, %p2789_p12 }
 0x466   : > { %p2234_p7 = pneg %p2233_p13 }
 0x4d4   : > { %v717_v1 = vpop.xlane.xlu1 %716 }
 0x4d5   : > { %2185 = vrcp.f32 %v717_v1 }
 0x4d8   : > { %v885_v2 = vpop.xlane.xlu1 %884 }
 0x4d9   : > { %2187 = vrcp.f32 %v885_v2 }
 0x4dc   : > { %v721_v3 = vpop.permute.xlu1 %720 }
 0x4dd   : > { %2009 = vmatpush3.msra.mxu1 %v721_v3 }
 0x4de   : > { %2018 = vmatprep.subr.mxu1 %v2302_v13 }
 0x4df   : > { %v2186_v4 = vpop.eup %2185 }
 0x4e0   : > { %v719_v5 = vmul.f32 %v2186_v4, %v2182_v59  ;;  %v1114_v14 = vpop.permute.xlu1 %1113 }
 0x4e2   : > { %2011 = vmatmul.mubr.msk.f32.vlgmr.msra.gmra.mrb[0].mxu1 %vm626_vm4, %v719_v5 }
 0x4e3   : > { %v2188_v7 = vpop.eup %2187  ;;  %2019 = vmatpush3.msra.mxu1 %v889_v6  ;;  %2020 = vmatprep.mubr.msk.f32.mxu1 %vm2301_vm1, %v2302_v13 }
 0x4e4   : > { %v887_v8 = vmul.f32 %v2188_v7, %v2184_v61  ;;  %2028 = vmatprep.subr.mxu1 %v2302_v13  ;;  %v1112_v17 = vpop.permute.xlu1 %1111 }
 0x4e6   : > { %2021 = vmatmul.mubr.msk.f32.vlgmr.msra.gmra.mrb[2].mxu1 %vm626_vm4, %v887_v8 }
 0x4e7   : > { %2030 = vmatprep.mubr.msk.f32.mxu1 %vm2301_vm1, %v2302_v13  ;;  %2029 = vmatpush3.msra.mxu1 %v796_v9 }
 0x4e8   : > { %2038 = vmatprep.subr.mxu1 %v2302_v13 }
 0x5b5   : > { %v792_v11 = vpop.f32.mrb[0].mxu1 }
 0x5b6   : > { %v2012_v12 = vpop.f32.mrb[1].mxu1  ;;  %2031 = vmatmul.mubr.msk.f32.vlgmr.msra.gmra.mrb[4].mxu1 %vm626_vm4, %v792_v11  ;;  %v1640_v11 = vld [vmem:[%s2765_s10] sm:$0xff] }
 0x5b7   : > { %2040 = vmatprep.mubr.msk.f32.mxu1 %vm2301_vm1, %v2302_v13  ;;  %v1642_v12 = vld [vmem:[%s2765_s10 + $0x10] sm:$0xff] }
 0x5b9   : > { %v960_v15 = vpop.f32.mrb[2].mxu1 }
 0x5ba   : > { %v2022_v16 = vpop.f32.mrb[3].mxu1  ;;  %2026 = vmatmul.mubr.msk.f32.vlgmr.msra.gmra.mrb[6].mxu0 %vm626_vm4, %v960_v15  ;;  %v1643_v15 = vld [vmem:[%s2765_s10 + $0x18] sm:$0xff] }
 0x5bb   : > { %2034 = vmatpush3.xpose.msk.msra.mxu0 %vm626_vm4, %v1114_v14  ;;  %2035 = vmatprep.mubr.msk.f32.mxu0 %vm2301_vm1, %v2302_v13  ;;  %v2103_v16 = vpack.c.bf16 %v1643_v15, %v1642_v12 }
 0x5bc   : > { %2043 = vmatprep.subr.mxu0 %v2302_v13 }
 0x5be   : > { %2036 = vmatmul.mubr.msk.f32.vlgmr.msra.gmra.mrb[8].mxu0 %vm626_vm4, %v1112_v17  ;;  %v1725_v17 = vld [vmem:[%s2767_s12] sm:$0xff] }
 0x5bf   : > { %2045 = vmatprep.mubr.msk.f32.mxu0 %vm2301_vm1, %v2302_v13  ;;  %2044 = vmatpush3.msra.mxu0 %v1278_v40  ;;  %v1731_v40 = vld [vmem:[%s2767_s12 + $0x30] sm:$0xff] }
 0x5c0   : > { %2053 = vmatprep.subr.mxu0 %v2302_v13 }
 0x689   : > { %v1107_v18 = vpop.f32.mrb[4].mxu1 }
 0x68a   : > { %v2032_v19 = vpop.f32.mrb[5].mxu1 }
 0x68b   : > { %v1727_v19 = vld [vmem:[%s2767_s12 + $0x10] sm:$0xff] }
 0x68d   : > { %v1034_v20 = vpop.f32.mrb[6].mxu0 }
 0x68e   : > { %v1108_v21 = vadd.f32 %v1107_v18, %v1034_v20  ;;  %v2027_v22 = vpop.f32.mrb[7].mxu0  ;;  %v1726_v18 = vld [vmem:[%s2767_s12 + $0x8] sm:$0xff] }
 0x68f   : > { %v2106_v20 = vpack.c.bf16 %v1726_v18, %v1725_v17 }
 0x691   : > { %v1185_v23 = vpop.f32.mrb[8].mxu0 }
 0x692   : > { %v1189_v24 = vmul.f32 0.35355338, %v1185_v23  ;;  %v2037_v25 = vpop.f32.mrb[9].mxu0  ;;  %v1729_v23 = vld [vmem:[%s2767_s12 + $0x20] sm:$0xff] }
 0x694   : > { %v1190_v26 = vadd.f32 %v1189_v24, %v2564_v42  ;;  %v1730_v24 = vld [vmem:[%s2767_s12 + $0x28] sm:$0xff] }
 0x695   : > { %v2112_v25 = vpack.c.bf16 %v1730_v24, %v1729_v23 }
 0x696   : > { %v1191_v27 = vsel %vm626_vm4, %v1190_v26, -inf }
 0x697   : > { %1192 = vmax.xlane.f32.xlu1 %v1191_v27 }
 0x6a8   : > { %1202 = vrot.lane.b32.xlu1 %v2543_v31, %s2310_s14  ;;  %s2235_s14 = sshll.u32 %s2314_s21, 4  ;;  %s2236_s14 = int_to_ptr.vmem [resolvable:$false] %s2235_s14 }
 0x6a9   : > { %p2238_p10 = scmp.lt.s32.totalorder %s2712_s22, %s2236_s14 }
 0x6ac   : > { %1353 = vrot.lane.b32.xlu1 %v2543_v31, %s2311_s29  ;;  %s2237_s29 = scalar_lea.vmem %s2236_s14, 256 }
 0x6ad   : > { %p2239_p2 = scmp.lt.s32.totalorder %s2237_s29, %s2231_s18 }
 0x6af   : > { %p2240_p4 = por %p2239_p2, %p2238_p10 }
 0x6b1   : > { %p2241_p5 = pnand %p2240_p4, %p2234_p7 }
 0x724   : > { %v1193_v28 = vpop.xlane.xlu1 %1192 }
 0x725   : > { %v1194_v29 = vsub.f32 %v1190_v26, %v1193_v28 }
 0x727   : > { %v1195_v30 = vmul.f32 1.442695, %v1194_v29 }
 0x728   : > { %v1203_v32 = vpop.permute.xlu1 %1202 }
 0x729   : > { %2189 = vpow2.f32 %v1195_v30  ;;  %2039 = vmatpush3.msra.mxu1 %v1203_v32 }
 0x72a   : > { %2048 = vmatprep.subr.mxu1 %v2302_v13 }
 0x72c   : > { %v1354_v39 = vpop.permute.xlu1 %1353 }
 0x733   : > { %v2190_v33 = vpop.eup %2189 }
 0x734   : > { %v1197_v34 = vsel %vm626_vm4, %v2190_v33, 0.0 }
 0x735   : > { %1198 = vadd.xlane.f32.xlu0 %v1197_v34 }
 0x74b   : > { %1355 = vrot.lane.b32.xlu0 %v2543_v31, %s2312_s19  ;;  %s1946_s19 = sshll.u32 %s2411_s17, 7  ;;  %s1817_s17 = scalar_lea.sflag [#allocation4], %s2495_s28 }
 0x74c   : > { %s2710_s15 = scalar_lea.hbm %s2788_s20, %s1946_s19 }
 0x7c2   : > { %v1199_v35 = vpop.xlane.xlu0 %1198 }
 0x7c3   : > { %2191 = vrcp.f32 %v1199_v35 }
 0x7c6   : > { %v1356_v38 = vpop.permute.xlu0 %1355 }
 0x7cd   : > { %v2192_v36 = vpop.eup %2191 }
 0x7ce   : > { %v1201_v37 = vmul.f32 %v2192_v36, %v2190_v33  ;;  %v1939_v36 = vld [vmem:[%s2763_s8] ss:$0 sm:$0xff] }
 0x7d0   : > { %2041 = vmatmul.mubr.msk.f32.vlgmr.msra.gmra.mrb[6].mxu1 %vm626_vm4, %v1201_v37 }
 0x7d1   : > { %2049 = vmatpush3.xpose.msk.msra.mxu1 %vm626_vm4, %v1356_v38  ;;  %2050 = vmatprep.mubr.msk.f32.mxu1 %vm2301_vm1, %v2302_v13 }
 0x7d2   : > { %2058 = vmatprep.subr.mxu1 %v2302_v13 }
 0x7d4   : > { %2051 = vmatmul.mubr.msk.f32.vlgmr.msra.gmra.mrb[8].mxu1 %vm626_vm4, %v1354_v39 }
 0x7d5   : > { %2060 = vmatprep.mubr.msk.f32.mxu1 %vm2301_vm1, %v2302_v13  ;;  %2059 = vmatpush3.msra.mxu1 %v1520_v54 }
 0x7d6   : > { %2105 = vmatprep.subr.bf16.mxu1 %v2300_v10 }
 0x8a3   : > { %v1274_v41 = vpop.f32.mrb[6].mxu1 }
 0x8a4   : > { %v2042_v43 = vpop.f32.mrb[7].mxu1  ;;  %2046 = vmatmul.mubr.msk.f32.vlgmr.msra.gmra.mrb[10].mxu0 %vm626_vm4, %v1274_v41  ;;  %v1732_v41 = vld [vmem:[%s2767_s12 + $0x38] sm:$0xff] }
 0x8a5   : > { %2055 = vmatprep.mubr.msk.f32.mxu0 %vm2301_vm1, %v2302_v13  ;;  %v2115_v43 = vpack.c.bf16 %v1732_v41, %v1731_v40 }
 0x8a7   : > { %v1427_v44 = vpop.f32.mrb[8].mxu1 }
 0x8a8   : > { %v1431_v45 = vmul.f32 0.35355338, %v1427_v44  ;;  %v2052_v46 = vpop.f32.mrb[9].mxu1  ;;  %v1941_v44 = vld [vmem:[%s2766_s11] ss:$0 sm:$0xff] }
 0x8aa   : > { %v1432_v47 = vadd.f32 %v1431_v45, %v2564_v42 }
 0x8ac   : > { %v1433_v48 = vsel %vm626_vm4, %v1432_v47, -inf }
 0x8ad   : > { %1434 = vmax.xlane.f32.xlu1 %v1433_v48 }
 0x93a   : > { %v1435_v49 = vpop.xlane.xlu1 %1434 }
 0x93b   : > { %v1436_v50 = vsub.f32 %v1432_v47, %v1435_v49  ;;  %v1943_v49 = vld [vmem:[%s2768_s13] ss:$0 sm:$0xff] }
 0x93d   : > { %v1437_v51 = vmul.f32 1.442695, %v1436_v50 }
 0x93f   : > { %2193 = vpow2.f32 %v1437_v51 }
 0x949   : > { %v2194_v52 = vpop.eup %2193 }
 0x94a   : > { %v1439_v53 = vsel %vm626_vm4, %v2194_v52, 0.0 }
 0x94b   : > { %1440 = vadd.xlane.f32.xlu0 %v1439_v53 }
 0x961   : > { %1444 = vrot.lane.b32.xlu0 %v2543_v31, %s2313_s27 }
 0x977   : > { %v1348_v42 = vpop.f32.mrb[10].mxu0 }
 0x978   : > { %v1352_v55 = vadd.f32 %v1348_v42, %v1108_v21  ;;  %v2047_v56 = vpop.f32.mrb[11].mxu0  ;;  %v1728_v21 = vld [vmem:[%s2767_s12 + $0x18] sm:$0xff] }
 0x979   : > { %v2109_v22 = vpack.c.bf16 %v1728_v21, %v1727_v19 }
 0x9d8   : > { %v1441_v57 = vpop.xlane.xlu0 %1440 }
 0x9d9   : > { %2195 = vrcp.f32 %v1441_v57 }
 0x9dc   : > { %v1445_v58 = vpop.permute.xlu0 %1444 }
 0x9dd   : > { %2054 = vmatpush3.msra.mxu0 %v1445_v58 }
 0x9de   : > { %2099 = vmatprep.subr.bf16.mxu0 %v2300_v10 }
 0x9e3   : > { %v2196_v59 = vpop.eup %2195 }
 0x9e4   : > { %v1443_v60 = vmul.f32 %v2196_v59, %v2194_v52 }
 0x9e6   : > { %2056 = vmatmul.mubr.msk.f32.vlgmr.msra.gmra.mrb[12].mxu0 %vm626_vm4, %v1443_v60 }
 0x9e7   : > { %2071 = vmatprep.mubr.msk.f32.mxu0 %vm2301_vm1, %v2302_v13 }
 0xab9   : > { %v1516_v31 = vpop.f32.mrb[12].mxu0 }
 0xaba   : > { %v2057_v61 = vpop.f32.mrb[13].mxu0  ;;  %2061 = vmatmul.mubr.msk.f32.vlgmr.msra.gmra.mrb[10].mxu1 %vm626_vm4, %v1516_v31 }
 0xabb   : > { %2090 = vmatprep.mubr.msk.f32.mxu1 %vm2301_vm1, %v2302_v13  ;;  %2107 = vmatpush3.bf16.msra.mxu1 %v2106_v20 }
 0xabc   : > { %2108 = vmatprep.subr.bf16.mxu1 %v2300_v10 }
 0xabf   : > { %2110 = vmatpush3.bf16.msra.mxu1 %v2109_v22 }
 0xac0   : > { %2111 = vmatprep.subr.bf16.mxu1 %v2300_v10 }
 0xac3   : > { %2113 = vmatpush3.bf16.msra.mxu1 %v2112_v25 }
 0xac4   : > { %2114 = vmatprep.subr.bf16.mxu1 %v2300_v10 }
 0xac7   : > { %2116 = vmatpush3.bf16.msra.mxu1 %v2115_v43 }
 0xb8d   : > { %v1590_v62 = vpop.f32.mrb[10].mxu1 }
 0xb8e   : > { %v1594_v1 = vadd.f32 %v1590_v62, %v1352_v55  ;;  %v2062_v2 = vpop.f32.mrb[11].mxu1 }
 0xb90   : > { %v1602_v3 = vadd.f32 %v1938_v63, %v1594_v1 }
 0xb92   : > { %v2644_v4 = vadd.f32 %v1602_v3, %v2505_v0  ;;  %v1641_v0 = vld [vmem:[%s2765_s10 + $0x8] sm:$0xff] }
 0xb93   : > { %v2100_v14 = vpack.c.bf16 %v1641_v0, %v1640_v11 }
 0xb94   : > { %v1606_v5 = vsel %vm500_vm0, %v2644_v4, 0.0 }
 0xb95   : > { %1607 = vadd.xlane.f32.xlu1 %v1606_v5  ;;  %2101 = vmatpush3.bf16.msra.mxu0 %v2100_v14 }
 0xb96   : > { %2102 = vmatprep.subr.bf16.mxu0 %v2300_v10  ;;  %v1940_v10 = vld [vmem:[%s2764_s9] ss:$0 sm:$0xff] }
 0xb99   : > { %2104 = vmatpush3.bf16.msra.mxu0 %v2103_v16 }
 0xc22   : > { %v1608_v6 = vpop.xlane.xlu1 %1607 }
 0xc23   : > { %v1609_v7 = vmul.f32 0.03125, %v1608_v6 }
 0xc25   : > { %v1610_v8 = vsub.f32 %v2644_v4, %v1609_v7 }
 0xc27   : > { %v1611_v13 = vmul.f32 %v1610_v8, %v1610_v8 }
 0xc29   : > { %v1612_v9 = vsel %vm500_vm0, %v1611_v13, 0.0 }
 0xc2a   : > { %1613 = vadd.xlane.f32.xlu1 %v1612_v9 }
 0xcb7   : > { %v1614_v26 = vpop.xlane.xlu1 %1613 }
 0xcb8   : > { %v1615_v27 = vmul.f32 0.032258064, %v1614_v26 }
 0xcba   : > { %2197 = vrsqrt.f32 %v1615_v27  ;;  %vm1618_vm5 = vcmp.eq.f32.partialorder %v1615_v27, inf  ;;  %v1621_v30 = vand.u32 2147483648, %v1615_v27  ;;  %vm1620_vm6 = vcmp.eq.f32.partialorder %v1615_v27, 0.0 }
 0xcc4   : > { %v2198_v28 = vpop.eup %2197 }
 0xcc5   : > { %v1617_v29 = vmul.f32 %v2198_v28, %v1615_v27 }
 0xcc7   : > { %v1619_v32 = vsel %vm1618_vm5, %v1615_v27, %v1617_v29 }
 0xcc8   : > { %v1622_v33 = vsel %vm1620_vm6, %v1621_v30, %v1619_v32 }
 0xcc9   : > { %v1623_v34 = vadd.f32 1e-06, %v1622_v33 }
 0xccb   : > { %2199 = vrcp.f32 %v1623_v34 }
 0xcd5   : > { %v2200_v35 = vpop.eup %2199 }
 0xcd6   : > { %v1625_v37 = vmul.f32 %v2200_v35, %v1610_v8 }
 0xcd8   : > { %v1632_v38 = vmul.f32 %v1939_v36, %v1625_v37 }
 0xcda   : > { %v1639_v39 = vadd.f32 %v1940_v10, %v1632_v38 }
 0xcdc   : > { %2072 = vmatmul.mubr.msk.f32.vlgmr.msra.gmra.mrb[14].mxu0 %vm500_vm0, %v1639_v39 }
 0xdaf   : > { %v1720_v45 = vpop.f32.mrb[14].mxu0 }
 0xdb0   : > { %v1721_v46 = vadd.f32 %v1941_v44, %v1720_v45  ;;  %v2073_v47 = vpop.f32.mrb[15].mxu0 }
 0xdb2   : > { %v1724_v48 = vmax.f32 %v1721_v46, 0.0 }
 0xdb4   : > { %2091 = vmatmul.mubr.msk.f32.vlgmr.msra.gmra.mrb[12].mxu1 %vm1740_vm7, %v1724_v48 }
 0xe87   : > { %v1810_v50 = vpop.f32.mrb[12].mxu1 }
 0xe88   : > { %v1811_v51 = vadd.f32 %v1943_v49, %v1810_v50  ;;  %v2092_v52 = vpop.f32.mrb[13].mxu1 }
 0xe8a   : > { %v1814_v53 = vadd.f32 %v1811_v51, %v2644_v4 }
 0xe8c   : > { %1815 = vst.msk [vmem:[%s493_s24] sm:$0xff] %vm500_vm0, %v1814_v53 }
 0xe8d   : > { %2244 = shalt.err (!%p2241_p5)
}
 0xe8e   : > { %s2245_s28 = scalar_lea.hbm %s2710_s15, 128  ;;  %s2249_s27 = scalar_lea.hbm %s2788_s20, 256 }
 0xe8f   : > { %p2246_p8 = scmp.ne.s32.totalorder %s2710_s15, %s2245_s28  ;;  %p2250_p1 = scmp.lt.u32.totalorder %s2710_s15, %s2788_s20 }
 0xe90   : > { %p2251_p3 = scmp.lt.u32.totalorder %s2249_s27, %s2245_s28  ;;  %p2253_p11 = scmp.lt.u32.totalorder %s2245_s28, %s2710_s15 }
 0xe91   : > { %p2247_p9 = pnand %p2246_p8, %p2789_p12 }
 0xe92   : > { %p2252_p6 = por %p2251_p3, %p2250_p1 }
 0xe93   : > { %p2248_p0 = pneg %p2247_p9 }
 0xe94   : > { %p2254_p13 = por %p2253_p11, %p2252_p6 }
 0xe96   : > { %p2255_p7 = pnand %p2254_p13, %p2248_p0 }
 0xe98   : > { %2258 = shalt.err (!%p2255_p7)
}
 0xe99   : > { %2119 = dma.vmem_to_hbm [thread:$0]  (%p2789_p12), %s2712_s22, 128, %s2710_s15, %s1817_s17  }
 0xe9a PF: > { %s2790_s18 = sld [smem:[#allocation8_spill]]  ;;  %p2791_p10 = scmp.ne.s32.totalorder %s2784_s26, 0 }
 0xe9b   : > { %p2792_p2 = scmp.ge.s32.totalorder %s2297_s16, 2 }
 0xe9d   : > { %p2126_p4 = pnand %p2792_p2, %p2791_p10 }
 0xea0   : > { %s1842_s14 = sand.u32 1, %s2790_s18  }
 0xea1   : > { %s1843_s29 = scalar_lea.sflag [#allocation4], %s1842_s14 }
 0xea2   : > { %2280 = dma.done.wait (!%p2126_p4), %s1843_s29, 128  }
 0xea3   : > { %2282 = vsyncadd (!%p2126_p4), %s1843_s29, 4294967168  ;;  %s2793_s16 = sld [smem:[#allocation10_spill]]  ;;  %s2794_s28 = sld [smem:[#allocation9_spill]] }
 0xea4   : > { %s2795_s15 = sld [smem:[#allocation11_spill]]  ;;  %s2796_s29 = smov %s2289_s30 }
 0xea9   : > { %p27_p5 = scmp.ge.s32.totalorder %s2793_s16, 4   ;;  %s2797_s30 = smov %s2794_s28 }
 0xeab   :  { %29 = sbr.rel (!%p27_p5) target bundleno = 7 (0x7), region = 124 }
 0xeb2   :  { %1848 = vsyncpa [#allocation3], 1 }
 0xeb3   :  { %1850 = vsyncpa [#allocation3 + $0x1], 1 }
 0xeb4   :  { %1851 = vsyncpa [#allocation4], 1 }
 0xeb5   :  { %1853 = vsyncpa [#allocation4 + $0x1], 1 }

</bundles_post_ra>
